<compile_context>
chip_gen: v6e
topology: v6e:2x2x1
jax: 0.10.0
libtpu: 0.0.40
codegen_flags: <defaults>
</compile_context>

<pallas_src>
import math

import jax
import jax.numpy as jnp
from jax.experimental import pallas as pl
from jax.experimental.pallas import tpu as pltpu


_INV_SQRT2 = 1.0 / math.sqrt(2.0)


def _gelu_exact(x):
    # nn.GELU() default is the exact erf-based GELU; computed in f32.
    return 0.5 * x * (1.0 + jax.lax.erf(x * _INV_SQRT2))


def _round_up(x, m):
    return ((x + m - 1) // m) * m


# ----------------------------------------------------------------------------
# Kernels
# ----------------------------------------------------------------------------

def _mlp_kernel_single(x_ref, w1_ref, b1_ref, w2_ref, b2_ref, o_ref):
    """Weights fully VMEM-resident: one fused fc1->GELU->fc2 pass per token tile."""
    h = jnp.dot(x_ref[...], w1_ref[...], preferred_element_type=jnp.float32)
    h = _gelu_exact(h + b1_ref[...].astype(jnp.float32))
    # TODO(synk): dropout with p > 0 (training mode) would need pltpu PRNG masking;
    # p = 0.0 is the identity and is omitted.
    out = jnp.dot(h.astype(w2_ref.dtype), w2_ref[...],
                  preferred_element_type=jnp.float32)
    o_ref[...] = (out + b2_ref[...].astype(jnp.float32)).astype(o_ref.dtype)


def _mlp_kernel_multi(x_ref, w1_ref, b1_ref, w2_ref, b2_ref, o_ref, acc_ref):
    """grid = (token_tiles, hidden_tiles); hidden is the trailing (arbitrary) axis.

    Per step: acc += gelu(x @ W1[:, hblk] + b1[hblk]) @ W2[hblk, :], with the fc2
    bias folded into the accumulator init and the result stored on the last step.
    b1 is resident as a (n_h, 1, th) block and indexed by the hidden program id.
    """
    h_idx = pl.program_id(1)

    @pl.when(h_idx == 0)
    def _init():
        acc_ref[...] = jnp.broadcast_to(
            b2_ref[...].astype(jnp.float32), acc_ref.shape)

    h = jnp.dot(x_ref[...], w1_ref[...], preferred_element_type=jnp.float32)
    h = _gelu_exact(h + b1_ref[h_idx].astype(jnp.float32))
    acc_ref[...] += jnp.dot(h.astype(w2_ref.dtype), w2_ref[...],
                            preferred_element_type=jnp.float32)

    @pl.when(h_idx == pl.num_programs(1) - 1)
    def _finalize():
        o_ref[...] = acc_ref[...].astype(o_ref.dtype)


# ----------------------------------------------------------------------------
# Tile selection
# ----------------------------------------------------------------------------

def _select_tiles(T, c_in, hidden, c_out_p, itemsize, vmem_budget):
    """Returns (token_tile, hidden_tile, n_hidden_tiles, est_vmem_footprint_bytes)."""

    def footprint(tm, th, single_pass):
        f = 2 * tm * c_in * itemsize        # x tile (double-buffered)
        f += 2 * c_in * th * itemsize       # W1 panel
        f += 2 * hidden * itemsize          # b1 (resident)
        f += 2 * th * c_out_p * itemsize    # W2 panel
        f += 2 * c_out_p * itemsize         # b2
        f += 2 * tm * c_out_p * itemsize    # out tile
        f += tm * th * 4                    # f32 GELU intermediate
        f += tm * th * itemsize             # h cast for the fc2 matmul
        if not single_pass:
            f += tm * c_out_p * 4           # f32 accumulator scratch
        return f

    T8 = _round_up(max(T, 1), 8)
    cap = min(512, T8)                      # 512 keeps v7x's 64 MiB VMEM happy

    # ---- Path A: full hidden in one pass -> weights resident in VMEM. ----------
    cands = list(range(cap, 7, -8))
    if T > 256:
        # Keep >= 2 token tiles so the "parallel" axis spans both v7x TensorCores.
        cands = [c for c in cands if c < T]
    fitting = [c for c in cands if footprint(c, hidden, True) <= vmem_budget]
    if fitting:
        best = fitting[0]
        n_tiles = -(-T // best)
        balanced = min(best, _round_up(-(-T // n_tiles), 8))
        # Prefer a tile that divides T exactly (skips the wrapper pad/slice) if it
        # is not dramatically smaller than the balanced choice.
        divisors = [c for c in fitting
                    if T % c == 0 and c >= 128 and 2 * c >= balanced]
        tm = divisors[0] if divisors else balanced
        return tm, hidden, 1, footprint(tm, hidden, True)

    # ---- Path B: tile the hidden axis (weights re-streamed per token tile). ----
    if hidden % 128 != 0:
        # A non-128-multiple hidden dim can only be a full-extent block; rare for
        # shapes this large -- run single-pass with a small token tile.
        return 8, hidden, 1, footprint(8, hidden, True)

    step = 256 if hidden % 256 == 0 else 128   # 256-aligned MXU passes on v6e/v7x
    th_cands = [t for t in range(hidden, 0, -step) if hidden % t == 0]
    th_floor = min(512, hidden)                # avoid acc-RMW / vst-slot dominance
    tm_cands = []
    for t in (min(256, T8), 128, 64, 32, 16, 8):
        t = min(t, T8)
        if t >= 8 and t not in tm_cands:
            tm_cands.append(t)

    for allow_below_floor in (False, True):
        for tm in tm_cands:
            for th in th_cands:
                if not allow_below_floor and th < th_floor:
                    continue
                if footprint(tm, th, False) <= vmem_budget:
                    return tm, th, hidden // th, footprint(tm, th, False)
    tm, th = 8, th_cands[-1]
    return tm, th, hidden // th, footprint(tm, th, False)


# ----------------------------------------------------------------------------
# Wrapper
# ----------------------------------------------------------------------------

def mlp_pallas(x, w1, b1, w2, b2, *, compute_dtype=None, hidden_tile=None):
    """x: (..., C_in) -> (..., C_out). w1: (C_in,H), b1: (H,), w2: (H,C_out), b2: (C_out,).

    compute_dtype: optionally cast x/W1/W2 (e.g. to bf16) for full-rate MXU; f32
    accumulation is kept.  Off by default to match the f32 reference exactly.
    hidden_tile: optional override forcing the hidden-tiled (multi-pass) path.
    """
    orig_shape = x.shape
    c_in = orig_shape[-1]
    hidden = w1.shape[1]
    c_out = w2.shape[1]

    x2d = x.reshape(-1, c_in)
    T = x2d.shape[0]
    out_dtype = x.dtype

    if compute_dtype is not None:
        x2d = x2d.astype(compute_dtype)
        w1 = w1.astype(compute_dtype)
        w2 = w2.astype(compute_dtype)

    itemsize = max(jnp.dtype(x2d.dtype).itemsize, jnp.dtype(w1.dtype).itemsize)

    # Lane-dense output: pad the output-feature dim to a multiple of 128 so the
    # writeback path uses unmasked vector stores; padded columns are sliced off.
    c_out_p = _round_up(c_out, 128)

    # Generation-aware VMEM budget (v7x: 64 MiB/TC, v5e/v6e: 128 MiB).
    try:
        vmem_cap = int(pltpu.get_tpu_info().vmem_capacity_bytes)
    except Exception:
        vmem_cap = 64 * 1024 * 1024  # conservative (v7x) default
    vmem_budget = int(vmem_cap * 0.75)

    tm, th, n_h, fp = _select_tiles(T, c_in, hidden, c_out_p, itemsize, vmem_budget)

    if hidden_tile is not None:
        assert hidden % hidden_tile == 0, "hidden must be divisible by hidden_tile"
        assert hidden_tile == hidden or hidden_tile % 128 == 0
        th = hidden_tile
        n_h = hidden // th

    # Token padding only when the chosen tile does not divide T (the tile selector
    # prefers divisors, so the hot path usually skips this entirely).
    if T % tm != 0:
        Tp = _round_up(T, tm)
        x2d = jnp.pad(x2d, ((0, Tp - T), (0, 0)))
    else:
        Tp = T

    # Pad fc2 weight/bias along the output-feature dim (no-op when 128-aligned).
    # NOTE: callers that reuse the params across many calls can pre-pad once.
    if c_out_p != c_out:
        w2 = jnp.pad(w2, ((0, 0), (0, c_out_p - c_out)))
        b2 = jnp.pad(b2, (0, c_out_p - c_out))

    b2_2d = b2.reshape(1, c_out_p)
    n_tok = Tp // tm

    # Cost estimate reflecting actual HBM traffic: weights are read once when
    # resident (n_h == 1), or once per token tile when the hidden dim is tiled.
    weight_reads = 1 if n_h == 1 else n_tok
    flops = 2 * Tp * c_in * hidden + 2 * Tp * hidden * c_out_p
    bytes_accessed = (x2d.size * itemsize
                      + (w1.size + w2.size) * itemsize * weight_reads
                      + (hidden + c_out_p) * itemsize
                      + Tp * c_out_p * jnp.dtype(out_dtype).itemsize)
    cost = pl.CostEstimate(flops=int(flops), transcendentals=int(Tp * hidden),
                           bytes_accessed=int(bytes_accessed))

    # Honest VMEM limit: measured footprint (incl. GELU intermediates and double
    # buffering) plus margin for Mosaic internal scratch, capped by the chip's VMEM.
    vmem_limit = int(min(vmem_cap * 0.92,
                         max(fp * 1.25 + (4 << 20), 32 << 20)))

    if n_h == 1:
        b1_arg = b1.reshape(1, hidden)
        grid = (n_tok,)
        in_specs = [
            pl.BlockSpec((tm, c_in), lambda i: (i, 0)),          # x tile
            pl.BlockSpec((c_in, hidden), lambda i: (0, 0)),      # W1 (resident)
            pl.BlockSpec((1, hidden), lambda i: (0, 0)),         # b1 (resident)
            pl.BlockSpec((hidden, c_out_p), lambda i: (0, 0)),   # W2 (resident)
            pl.BlockSpec((1, c_out_p), lambda i: (0, 0)),        # b2 (resident)
        ]
        out_specs = pl.BlockSpec((tm, c_out_p), lambda i: (i, 0))
        scratch = ()
        kernel = _mlp_kernel_single
        dim_sem = ("parallel",)
    else:
        b1_arg = b1.reshape(n_h, 1, th)
        grid = (n_tok, n_h)
        in_specs = [
            pl.BlockSpec((tm, c_in), lambda i, h: (i, 0)),        # x tile (resident over h)
            pl.BlockSpec((c_in, th), lambda i, h: (0, h)),        # W1 hidden panel
            pl.BlockSpec((n_h, 1, th), lambda i, h: (0, 0, 0)),   # b1 (resident, indexed in-kernel)
            pl.BlockSpec((th, c_out_p), lambda i, h: (h, 0)),     # W2 hidden panel
            pl.BlockSpec((1, c_out_p), lambda i, h: (0, 0)),      # b2 (resident)
        ]
        out_specs = pl.BlockSpec((tm, c_out_p), lambda i, h: (i, 0))
        scratch = (pltpu.VMEM((tm, c_out_p), jnp.float32),)
        kernel = _mlp_kernel_multi
        dim_sem = ("parallel", "arbitrary")

    out = pl.pallas_call(
        kernel,
        out_shape=jax.ShapeDtypeStruct((Tp, c_out_p), out_dtype),
        grid_spec=pltpu.PrefetchScalarGridSpec(
            num_scalar_prefetch=0,
            grid=grid,
            in_specs=in_specs,
            out_specs=out_specs,
            scratch_shapes=scratch,
        ),
        compiler_params=pltpu.CompilerParams(
            dimension_semantics=dim_sem,
            vmem_limit_bytes=vmem_limit),
        cost_estimate=cost,
    )(x2d, w1, b1_arg, w2, b2_2d)

    if Tp != T or c_out_p != c_out:
        out = out[:T, :c_out]
    return out.reshape(*orig_shape[:-1], c_out)


# ----------------------------------------------------------------------------
# Reference + params
# ----------------------------------------------------------------------------

def init_mlp_params(key, in_features, hidden_features, out_features, dtype=jnp.float32):
    """Deterministic init mimicking nn.Linear's uniform(-1/sqrt(fan_in), 1/sqrt(fan_in))."""
    k1, k2, k3, k4 = jax.random.split(key, 4)
    bound1 = 1.0 / math.sqrt(in_features)
    bound2 = 1.0 / math.sqrt(hidden_features)
    # Stored transposed relative to PyTorch (in, out) so the kernel does x @ W.
    w1 = jax.random.uniform(k1, (in_features, hidden_features), dtype, -bound1, bound1)
    b1 = jax.random.uniform(k2, (hidden_features,), dtype, -bound1, bound1)
    w2 = jax.random.uniform(k3, (hidden_features, out_features), dtype, -bound2, bound2)
    b2 = jax.random.uniform(k4, (out_features,), dtype, -bound2, bound2)
    return w1, b1, w2, b2


def _mlp_ref(x, w1, b1, w2, b2):
    h = x @ w1 + b1
    h = 0.5 * h * (1.0 + jax.lax.erf(h * _INV_SQRT2))
    return h @ w2 + b2


if __name__ == "__main__":
    # Small shapes consistent with the module: token tensor (B, N, C_in).
    B, N = 2, 8
    in_features, hidden_features = 16, 32
    out_features = in_features  # module default: out_features = in_features

    key = jax.random.PRNGKey(0)
    kx, kp, kx2, kx3 = jax.random.split(key, 4)
    x = jax.random.normal(kx, (B, N, in_features), dtype=jnp.float32)
    w1, b1, w2, b2 = init_mlp_params(kp, in_features, hidden_features, out_features)

    # Weight-resident single-pass path.
    y = jax.block_until_ready(mlp_pallas(x, w1, b1, w2, b2))
    y_ref = _mlp_ref(x, w1, b1, w2, b2)
    assert y.shape == (B, N, out_features)
    assert jnp.allclose(y, y_ref, atol=1e-4, rtol=1e-5)

    # Ragged token count exercises the token-padding path.
    x_ragged = jax.random.normal(kx2, (3, 5, in_features), dtype=jnp.float32)
    y2 = jax.block_until_ready(mlp_pallas(x_ragged, w1, b1, w2, b2))
    y2_ref = _mlp_ref(x_ragged, w1, b1, w2, b2)
    assert y2.shape == (3, 5, out_features)
    assert jnp.allclose(y2, y2_ref, atol=1e-4, rtol=1e-5)

    # Multi-token-tile path (grid > 1 on the parallel axis, divisor tile -> no pad).
    x_big = jax.random.normal(kx3, (2, 200, in_features), dtype=jnp.float32)
    y3 = jax.block_until_ready(mlp_pallas(x_big, w1, b1, w2, b2))
    y3_ref = _mlp_ref(x_big, w1, b1, w2, b2)
    assert y3.shape == (2, 200, out_features)
    assert jnp.allclose(y3, y3_ref, atol=1e-4, rtol=1e-5)

    # Hidden-tiled (multi-pass) fallback path with the f32 accumulator scratch.
    w1b, b1b, w2b, b2b = init_mlp_params(kp, in_features, 256, out_features)
    y4 = jax.block_until_ready(mlp_pallas(x, w1b, b1b, w2b, b2b, hidden_tile=128))
    y4_ref = _mlp_ref(x, w1b, b1b, w2b, b2b)
    assert y4.shape == (B, N, out_features)
    assert jnp.allclose(y4, y4_ref, atol=1e-4, rtol=1e-5)

    print("KERNEL_OK")
</pallas_src>

<mosaic_0001>
module attributes {stable_mosaic.version = 11 : i64} {
  func.func @_mlp_kernel_single(%arg0: i32, %arg1: memref<16x16xf32, #tpu.memory_space<vmem>>, %arg2: memref<16x32xf32, #tpu.memory_space<vmem>>, %arg3: memref<1x32xf32, #tpu.memory_space<vmem>>, %arg4: memref<32x128xf32, #tpu.memory_space<vmem>>, %arg5: memref<1x128xf32, #tpu.memory_space<vmem>>, %arg6: memref<16x128xf32, #tpu.memory_space<vmem>>) attributes {dimension_semantics = [#tpu.dimension_semantics<parallel>], iteration_bounds = array<i64: 1>, scalar_prefetch = 0 : i64, scratch_operands = 0 : i64, tpu.core_type = #tpu.core_type<tc>, window_params = [{transform_indices = @transform_0, window_bounds = array<i64: 16, 16>}, {pipeline_mode = #tpu.pipeline_mode<synchronous>, transform_indices = @transform_1, window_bounds = array<i64: 16, 32>}, {pipeline_mode = #tpu.pipeline_mode<synchronous>, transform_indices = @transform_2, window_bounds = array<i64: 1, 32>}, {pipeline_mode = #tpu.pipeline_mode<synchronous>, transform_indices = @transform_3, window_bounds = array<i64: 32, 128>}, {pipeline_mode = #tpu.pipeline_mode<synchronous>, transform_indices = @transform_4, window_bounds = array<i64: 1, 128>}, {transform_indices = @transform_5, window_bounds = array<i64: 16, 128>}]} {
    %c0 = arith.constant 0 : index
    %c0_0 = arith.constant 0 : index
    %0 = vector.load %arg1[%c0, %c0_0] : memref<16x16xf32, #tpu.memory_space<vmem>>, vector<16x16xf32>
    %c0_1 = arith.constant 0 : index
    %c0_2 = arith.constant 0 : index
    %1 = vector.load %arg2[%c0_1, %c0_2] : memref<16x32xf32, #tpu.memory_space<vmem>>, vector<16x32xf32>
    %cst = arith.constant dense<0.000000e+00> : vector<16x32xf32>
    %2 = tpu.matmul %0, %1, %cst {dimension_numbers = #tpu.dot_dimension_numbers<[1], [0], [0], [1], [0, 0, 1, 1], [], []>} : vector<16x16xf32>, vector<16x32xf32>, vector<16x32xf32> -> vector<16x32xf32>
    %c0_3 = arith.constant 0 : index
    %c0_4 = arith.constant 0 : index
    %3 = vector.load %arg3[%c0_3, %c0_4] : memref<1x32xf32, #tpu.memory_space<vmem>>, vector<1x32xf32>
    %4 = vector.broadcast %3 : vector<1x32xf32> to vector<16x32xf32>
    %5 = arith.addf %2, %4 : vector<16x32xf32>
    %cst_5 = arith.constant 5.000000e-01 : f32
    %6 = vector.broadcast %cst_5 : f32 to vector<16x32xf32>
    %7 = arith.mulf %6, %5 : vector<16x32xf32>
    %cst_6 = arith.constant 0.707106769 : f32
    %8 = vector.broadcast %cst_6 : f32 to vector<16x32xf32>
    %9 = arith.mulf %5, %8 : vector<16x32xf32>
    %10 = math.erf %9 : vector<16x32xf32>
    %cst_7 = arith.constant 1.000000e+00 : f32
    %11 = vector.broadcast %cst_7 : f32 to vector<16x32xf32>
    %12 = arith.addf %11, %10 : vector<16x32xf32>
    %13 = arith.mulf %7, %12 : vector<16x32xf32>
    %c0_8 = arith.constant 0 : index
    %c0_9 = arith.constant 0 : index
    %14 = vector.load %arg4[%c0_8, %c0_9] : memref<32x128xf32, #tpu.memory_space<vmem>>, vector<32x128xf32>
    %cst_10 = arith.constant dense<0.000000e+00> : vector<16x128xf32>
    %15 = tpu.matmul %13, %14, %cst_10 {dimension_numbers = #tpu.dot_dimension_numbers<[1], [0], [0], [1], [0, 0, 1, 1], [], []>} : vector<16x32xf32>, vector<32x128xf32>, vector<16x128xf32> -> vector<16x128xf32>
    %c0_11 = arith.constant 0 : index
    %c0_12 = arith.constant 0 : index
    %16 = vector.load %arg5[%c0_11, %c0_12] : memref<1x128xf32, #tpu.memory_space<vmem>>, vector<1x128xf32>
    %17 = vector.broadcast %16 : vector<1x128xf32> to vector<16x128xf32>
    %18 = arith.addf %15, %17 : vector<16x128xf32>
    %c0_13 = arith.constant 0 : index
    %c0_14 = arith.constant 0 : index
    %19 = vector.load %arg6[%c0_13, %c0_14] : memref<16x128xf32, #tpu.memory_space<vmem>>, vector<16x128xf32>
    tpu.vector_store %arg6[%c0_13, %c0_14], %18 {strides = array<i32>} : memref<16x128xf32, #tpu.memory_space<vmem>>, vector<16x128xf32>,
    return
  }
  func.func @transform_0(%arg0: i32) -> (i32, i32) {
    %c0_i32 = arith.constant 0 : i32
    %c0_i32_0 = arith.constant 0 : i32
    return %arg0, %c0_i32 : i32, i32
  }
  func.func @transform_1(%arg0: i32) -> (i32, i32) {
    %c0_i32 = arith.constant 0 : i32
    %c0_i32_0 = arith.constant 0 : i32
    %c0_i32_1 = arith.constant 0 : i32
    return %c0_i32, %c0_i32_0 : i32, i32
  }
  func.func @transform_2(%arg0: i32) -> (i32, i32) {
    %c0_i32 = arith.constant 0 : i32
    %c0_i32_0 = arith.constant 0 : i32
    %c0_i32_1 = arith.constant 0 : i32
    return %c0_i32, %c0_i32_0 : i32, i32
  }
  func.func @transform_3(%arg0: i32) -> (i32, i32) {
    %c0_i32 = arith.constant 0 : i32
    %c0_i32_0 = arith.constant 0 : i32
    %c0_i32_1 = arith.constant 0 : i32
    return %c0_i32, %c0_i32_0 : i32, i32
  }
  func.func @transform_4(%arg0: i32) -> (i32, i32) {
    %c0_i32 = arith.constant 0 : i32
    %c0_i32_0 = arith.constant 0 : i32
    %c0_i32_1 = arith.constant 0 : i32
    return %c0_i32, %c0_i32_0 : i32, i32
  }
  func.func @transform_5(%arg0: i32) -> (i32, i32) {
    %c0_i32 = arith.constant 0 : i32
    %c0_i32_0 = arith.constant 0 : i32
    return %arg0, %c0_i32 : i32, i32
  }
}

</mosaic_0001>

<bundles_post_ra>
// kernel: tpu_custom_call.1
= control target key start
LH: loop header
LB: loop body
LE: loop exit
PB: predicated region body
PF: predicated region fallthrough
CT: control target
= control target key end

     0   :  { %10 = vsyncpa [#allocation3], 0  ;;  %s474_s0 = inlined_call_operand.hbm [shape: f32[16,16], index: 0, kind: input, shape index: {}]   ;;  %s475_s1 = inlined_call_operand.hbm [shape: f32[16,32], index: 1, kind: input, shape index: {}]   ;;  %s476_s2 = inlined_call_operand.vmem [shape: f32[1,32], index: 2, kind: input, shape index: {}]   ;;  %s477_s3 = inlined_call_operand.hbm [shape: f32[32,128], index: 3, kind: input, shape index: {}]   ;;  %s478_s4 = inlined_call_operand.vmem [shape: f32[1,128], index: 4, kind: input, shape index: {}]   ;;  %s479_s5 = inlined_call_operand.hbm [shape: f32[16,128], index: 5, kind: output, shape index: {}]  }
   0x1   :  { %11 = vsyncpa [#allocation6], 0 }
   0x2   :  { %12 = vsyncpa [#allocation4], 0  ;;  %s408_s18 = smov [#allocation5]   ;;  %s409_s20 = smov [#allocation2]  }
   0x3   :  { %s30_s19 = sshll.u32 %s408_s18, 4  ;;  %s18_s21 = sshll.u32 %s409_s20, 4  ;;  %s31_s19 = int_to_ptr.vmem [resolvable:$true] %s30_s19  ;;  %s19_s21 = int_to_ptr.vmem [resolvable:$true] %s18_s21 }
   0x4   :  { %s330_s22 = scalar_lea.vmem %s31_s19, 256  ;;  %p335_p1 = scmp.lt.s32.totalorder %s31_s19, %s31_s19 }
   0x5   :  { %p331_p0 = scmp.ne.s32.totalorder %s31_s19, %s330_s22  ;;  %p336_p2 = scmp.lt.s32.totalorder %s330_s22, %s330_s22 }
   0x7   :  { %p337_p3 = por %p336_p2, %p335_p1 }
   0x9   :  { %p338_p4 = pnand %p337_p3, %p331_p0 }
   0xb   :  { %341 = shalt.err (!%p338_p4)
}
   0xc   :  { %s410_s23 = smov 128   ;;  %s411_s24 = smov 8  }
   0xd   :  { %36 = dma.hbm_to_vmem [thread:$0]  %s475_s1, 256, %s31_s19, [#allocation6], %s410_s23, %s410_s23, %s411_s24  }
   0xe   :  { %s350_s27 = scalar_lea.vmem %s19_s21, 256  ;;  %p355_p6 = scmp.lt.s32.totalorder %s19_s21, %s19_s21 }
   0xf   :  { %p351_p5 = scmp.ne.s32.totalorder %s19_s21, %s350_s27  ;;  %p356_p7 = scmp.lt.s32.totalorder %s350_s27, %s350_s27 }
  0x11   :  { %p357_p8 = por %p356_p7, %p355_p6 }
  0x13   :  { %p358_p9 = pnand %p357_p8, %p351_p5 }
  0x15   :  { %361 = shalt.err (!%p358_p9)
}
  0x16   :  { %24 = dma.hbm_to_vmem [thread:$0]  %s474_s0, 256, %s19_s21, [#allocation3], %s410_s23, %s410_s23, %s411_s24  }
  0x17   :  { %s412_s30 = smov [#allocation7]  }
  0x18   :  { %s44_s6 = sshll.u32 %s412_s30, 4  ;;  %s45_s6 = int_to_ptr.vmem [resolvable:$true] %s44_s6 }
  0x19   :  { %s370_s7 = scalar_lea.vmem %s45_s6, 512  ;;  %p375_p11 = scmp.lt.s32.totalorder %s45_s6, %s45_s6 }
  0x1a   :  { %p371_p10 = scmp.ne.s32.totalorder %s45_s6, %s370_s7  ;;  %p376_p12 = scmp.lt.s32.totalorder %s370_s7, %s370_s7 }
  0x1c   :  { %p377_p13 = por %p376_p12, %p375_p11 }
  0x1e   :  { %p378_p0 = pnand %p377_p13, %p371_p10 }
  0x20   :  { %381 = shalt.err (!%p378_p0)
}
  0x21   :  { %50 = dma.hbm_to_vmem [thread:$0]  %s477_s3, 512, %s45_s6, [#allocation6], %s410_s23, %s410_s23, %s411_s24  }
  0x22   :  { %402 = dma.done.wait [#allocation3], 256  }
  0x23   :  { %403 = vsyncadd [#allocation3], 4294967040 }
  0x24   :  { %404 = dma.done.wait [#allocation6], 768  }
  0x25   :  { %405 = vsyncadd [#allocation6], 4294966528  ;;  %vm73_vm0 = vcmask 130048   ;;  %v65_v0 = vld [vmem:[#allocation5 + $0x8] sm:$0xff]  ;;  %v64_v1 = vld [vmem:[#allocation5] sm:$0xff]  ;;  %vm176_vm1 = vcmask 261120  }
  0x26   :  { %v62_v2 = vld [vmem:[#allocation2] sm:$0xff]  ;;  %294 = vmatprep.subr.mxu0 %v65_v0  ;;  %v63_v3 = vld [vmem:[#allocation2 + $0x8] sm:$0xff]  ;;  %v168_v4 = vld [vmem:[#allocation7 + $0x18] sm:$0xff]  ;;  %s413_s10 = smov [#allocation8]  }
  0x27   :  { %298 = vmatprep.mubr.msk.f32.mxu0 %vm73_vm0, %v62_v2  ;;  %295 = vmatpush3.msra.mxu0 %v65_v0  ;;  %v167_v5 = vld [vmem:[#allocation7 + $0x10] sm:$0xff]  ;;  %v166_v6 = vld [vmem:[#allocation7 + $0x8] sm:$0xff]  ;;  %v165_v7 = vld [vmem:[#allocation7] sm:$0xff]  ;;  %s265_s11 = sshll.u32 %s413_s10, 4  ;;  %s266_s11 = int_to_ptr.vmem [resolvable:$true] %s265_s11 }
  0x28   :  { %296 = vmatprep.subr.mxu0 %v64_v1  ;;  %301 = vmatprep.subr.mxu1 %v168_v4  ;;  %v278_v8 = vld [vmem:[%s476_s2] ss:$0 sm:$0xff]  ;;  %s382_s12 = scalar_lea.vmem %s266_s11, 256  ;;  %p387_p2 = scmp.lt.s32.totalorder %s266_s11, %s266_s11 }
  0x29   :  { %297 = vmatpush3.msra.mxu0 %v64_v1  ;;  %302 = vmatpush3.msra.mxu1 %v168_v4  ;;  %v281_v23 = vld [vmem:[%s478_s4] ss:$0 sm:$0xff]  ;;  %p383_p1 = scmp.ne.s32.totalorder %s266_s11, %s382_s12  ;;  %p388_p3 = scmp.lt.s32.totalorder %s382_s12, %s382_s12 }
  0x2a   :  { %299 = vmatmul.mubr.msk.f32.vlgmr.msra.gmra.mxu0 %vm73_vm0, %v63_v3  ;;  %303 = vmatprep.subr.mxu1 %v167_v5 }
  0x2b   :  { %304 = vmatpush3.msra.mxu1 %v167_v5  ;;  %p389_p4 = por %p388_p3, %p387_p2 }
  0x2c   :  { %305 = vmatprep.subr.mxu1 %v166_v6 }
  0x2d   :  { %306 = vmatpush3.msra.mxu1 %v166_v6  ;;  %p390_p5 = pnand %p389_p4, %p383_p1 }
  0x2e   :  { %307 = vmatprep.subr.mxu1 %v165_v7 }
  0x2f   :  { %308 = vmatpush3.msra.mxu1 %v165_v7 }
  0xea   :  { %v300_v9 = vpop.f32.mrf.mxu0 }
  0xeb   :  { %v152_v10 = vadd.f32 %v300_v9, %v278_v8 }
  0xec   :  { %v146_v11 = vpop.f32.mrf.mxu0 }
  0xed   :  { %v158_v12 = vmul.f32 0.70710677, %v152_v10  ;;  %v147_v13 = vadd.f32 %v278_v8, %v146_v11  ;;  %v156_v20 = vmul.f32 0.5, %v152_v10 }
  0xef   :  { %318 = verf.f32 %v158_v12  ;;  %v157_v14 = vmul.f32 0.70710677, %v147_v13  ;;  %v155_v18 = vmul.f32 0.5, %v147_v13 }
  0xf1   :  { %320 = verf.f32 %v157_v14 }
  0xfc   :  { %v319_v15 = vpop.eup %318 }
  0xfd   :  { %v162_v17 = vadd.f32 1.0, %v319_v15 }
  0xfe   :  { %v321_v16 = vpop.eup %320 }
  0xff   :  { %v161_v19 = vadd.f32 1.0, %v321_v16  ;;  %v164_v22 = vmul.f32 %v162_v17, %v156_v20 }
 0x101   :  { %v163_v21 = vmul.f32 %v161_v19, %v155_v18 }
 0x103   :  { %309 = vmatprep.mubr.msk.f32.mxu1 %vm176_vm1, %v163_v21 }
 0x104   :  { %310 = vmatmul.mubr.msk.f32.vlgmr.msra.gmra.mxu1 %vm176_vm1, %v164_v22 }
 0x1c4   :  { %v311_v24 = vpop.f32.mrf.mxu1 }
 0x1c5   :  { %v255_v25 = vadd.f32 %v311_v24, %v281_v23 }
 0x1c6   :  { %v249_v26 = vpop.f32.mrf.mxu1 }
 0x1c7   :  { %259 = vst [vmem:[#allocation8 + $0x8] sm:$0xff] %v255_v25  ;;  %v250_v27 = vadd.f32 %v281_v23, %v249_v26 }
 0x1c9   :  { %258 = vst [vmem:[#allocation8] sm:$0xff] %v250_v27 }
 0x1ca   :  { %393 = shalt.err (!%p390_p5)
}
 0x1cb   :  { %271 = dma.vmem_to_hbm [thread:$0]  %s266_s11, 256, %s479_s5, [#allocation4], %s410_s23, %s410_s23, %s411_s24  }
 0x1cc   :  { %406 = dma.done.wait [#allocation4], 256  }
 0x1cd   :  { %407 = vsyncadd [#allocation4], 4294967040 }
 0x1ce   :  { %275 = vsyncpa [#allocation3], 1 }
 0x1cf   :  { %276 = vsyncpa [#allocation6], 1 }
 0x1d0   :  { %277 = vsyncpa [#allocation4], 1 }

</bundles_post_ra>
